<compile_context>
chip_gen: v7x
topology: tpu7x:2x2x1
jax: 0.10.0
libtpu: 0.0.40
codegen_flags: <defaults>
</compile_context>

<pallas_src>
import functools

import jax
import jax.numpy as jnp
from jax import lax
from jax.experimental import pallas as pl
from jax.experimental.pallas import tpu as pltpu


# ----------------------------- Pallas kernel -------------------------------

def _ec_gcn_layer_kernel(hT_ref, hsel_ref, adjT_ref, w_ref, oT_ref, *,
                         num_singleton_nodes, tile_n):
    """One EC_GCNConv layer on one destination-column tile.

    hT_ref   : [F, N_pad] f32   full node features (transposed), VMEM-resident
    hsel_ref : [F, tile_n] f32  dst-column slice of hT (self/A term)
    adjT_ref : [T, N_pad, tile_n] bf16  typed adjacency, adjT[t, src, dst]
    w_ref    : [F, (T+1)*F + 8] f32     [A | B0..B(T-1) | bs | bp | 0]
    oT_ref   : [F, tile_n] f32          clipped output columns
    """
    T = adjT_ref.shape[0]

    # bf16 x bf16 -> f32 is the native MXU rate; adjacency counts are
    # bf16-exact and hT rounding stays well inside the test tolerance.
    hT_bf = hT_ref[...].astype(jnp.bfloat16)

    parts = [hsel_ref[...]]                                  # A-path (f32)
    for t in range(T):
        parts.append(jnp.dot(hT_bf, adjT_ref[t],
                             preferred_element_type=jnp.float32))

    # 8-row bias-selector block: row 0 = node is singleton, row 1 = complement,
    # rows 2..7 = 0 (sublane alignment).  Picked up by the [bs | bp | 0]
    # columns appended to W, so the bias rides the fused MXU contraction.
    col0 = pl.program_id(0) * tile_n
    col = col0 + lax.broadcasted_iota(jnp.int32, (8, tile_n), 1)
    row = lax.broadcasted_iota(jnp.int32, (8, tile_n), 0)
    is_single = (col < num_singleton_nodes).astype(jnp.float32)
    parts.append(jnp.where(row == 0, is_single,
                           jnp.where(row == 1, 1.0 - is_single, 0.0)))

    catT = jnp.concatenate(parts, axis=0)                    # [(T+1)*F+8, tile_n]
    outT = jnp.dot(w_ref[...], catT, preferred_element_type=jnp.float32)
    oT_ref[...] = jnp.clip(outT, 0.0, 1.0)                   # clipped_relu(a=1)


def ec_gcn_layer_pallas(hT, adjT, w, *, num_singleton_nodes, tile_n):
    Fdim, N_pad = hT.shape
    T = adjT.shape[0]
    K_pad = w.shape[1]
    n_tiles = N_pad // tile_n

    # Streamed adjacency spec; deepen the pipeline when there are enough tiles.
    n_adj_buf = 2
    adj_kwargs = {}
    if n_tiles >= 3:
        adj_kwargs["pipeline_mode"] = pl.Buffered(3)
        n_adj_buf = 3
    adj_spec = pl.BlockSpec((T, N_pad, tile_n), lambda j: (0, 0, j),
                            **adj_kwargs)

    flops = 2 * Fdim * N_pad * (T * N_pad + K_pad)
    bytes_accessed = (4 * Fdim * N_pad            # hT (resident)
                      + 4 * Fdim * N_pad          # tiled hT view
                      + 2 * T * N_pad * N_pad     # bf16 adjacency, streamed
                      + 4 * Fdim * K_pad          # stacked weights + biases
                      + 4 * Fdim * N_pad)         # output

    # Explicit scoped-VMEM request (v5e default is 16 MiB); capped below the
    # v7x 64 MiB physical VMEM.
    vmem_need = (n_adj_buf * T * N_pad * tile_n * 2      # adj tile buffers
                 + 2 * Fdim * N_pad * 4                  # resident hT (dbl buf)
                 + 2 * Fdim * tile_n * 4                 # tiled hT
                 + 2 * Fdim * K_pad * 4                  # weights
                 + 2 * Fdim * tile_n * 4                 # output tile
                 + (K_pad + (T + 1) * Fdim) * tile_n * 4)  # catT / msg temps
    vmem_limit = int(min(vmem_need * 2 + (8 << 20), 48 << 20))

    kernel = functools.partial(_ec_gcn_layer_kernel,
                               num_singleton_nodes=num_singleton_nodes,
                               tile_n=tile_n)
    return pl.pallas_call(
        kernel,
        out_shape=jax.ShapeDtypeStruct((Fdim, N_pad), jnp.float32),
        grid_spec=pltpu.PrefetchScalarGridSpec(
            num_scalar_prefetch=0,
            grid=(n_tiles,),
            in_specs=[
                pl.BlockSpec((Fdim, N_pad), lambda j: (0, 0)),   # hT resident
                pl.BlockSpec((Fdim, tile_n), lambda j: (0, j)),  # dst-col slice
                adj_spec,                                        # streamed adj
                pl.BlockSpec((Fdim, K_pad), lambda j: (0, 0)),   # stacked W
            ],
            out_specs=pl.BlockSpec((Fdim, tile_n), lambda j: (0, j)),
        ),
        compiler_params=pltpu.CompilerParams(
            dimension_semantics=("parallel",),
            vmem_limit_bytes=vmem_limit),
        cost_estimate=pl.CostEstimate(flops=flops, transcendentals=0,
                                      bytes_accessed=bytes_accessed),
    )(hT, hT, adjT, w)


# ------------------------------- JAX glue -----------------------------------

def _pick_tiling(num_nodes):
    """Lane-dense padded node count and dst-column tile size."""
    n_pad = max(128, -(-num_nodes // 128) * 128)
    if n_pad >= 1024 and n_pad % 512 == 0:
        tile_n = 512
    elif n_pad >= 512 and n_pad % 256 == 0:
        tile_n = 256
    else:
        tile_n = 128
    return n_pad, tile_n


def build_typed_adjacency_T(edge_index, edge_type, num_nodes_pad,
                            num_edge_types):
    """adjT[t, src, dst] = # of type-t edges src -> dst.

    bf16 is exact for integer multiplicities <= 256 per (type, src, dst).
    # TODO(synk): add a guard/clamp if heavily parallel edges (>256) are possible.
    """
    src, dst = edge_index[0], edge_index[1]
    adjT = jnp.zeros((num_edge_types, num_nodes_pad, num_nodes_pad),
                     jnp.float32)
    adjT = adjT.at[edge_type, src, dst].add(1.0)
    return adjT.astype(jnp.bfloat16)


def stack_layer_weights(A, B, bias_single, bias_pair):
    """W = [A | B0 | ... | B(T-1) | bs | bp | 0]  ->  [F, (T+1)*F + 8]."""
    T, Fdim, _ = B.shape
    cols = [A] + [B[t] for t in range(T)]
    cols += [bias_single[:, None], bias_pair[:, None],
             jnp.zeros((Fdim, 6), A.dtype)]
    return jnp.concatenate(cols, axis=1)


def init_ec_gcn_params(key, num_features, num_edge_types):
    kA, kB, ks, kp = jax.random.split(key, 4)
    A = 0.01 * jax.random.normal(kA, (num_features, num_features), jnp.float32)
    B = 0.01 * jax.random.normal(kB, (num_edge_types, num_features,
                                      num_features), jnp.float32)
    bias_single = 0.001 * jax.random.normal(ks, (num_features,), jnp.float32)
    bias_pair = 0.001 * jax.random.normal(kp, (num_features,), jnp.float32)
    return A, B, bias_single, bias_pair


def gnn_forward(x, edge_index, edge_type, params1, params2,
                num_edge_types, num_singleton_nodes):
    N, Fdim = x.shape
    N_pad, tile_n = _pick_tiling(N)

    adjT = build_typed_adjacency_T(edge_index, edge_type, N_pad,
                                   num_edge_types)
    xT_pad = jnp.zeros((Fdim, N_pad), jnp.float32).at[:, :N].set(x.T)

    w1 = stack_layer_weights(*params1)
    w2 = stack_layer_weights(*params2)

    h1T = ec_gcn_layer_pallas(xT_pad, adjT, w1,
                              num_singleton_nodes=num_singleton_nodes,
                              tile_n=tile_n)
    # F.dropout(p=0, training) is the identity.
    h2T = ec_gcn_layer_pallas(h1T, adjT, w2,
                              num_singleton_nodes=num_singleton_nodes,
                              tile_n=tile_n)
    return h2T[:, :N].T


# -------------------- pure-JAX reference (torch semantics) ------------------

def gnn_ref(x, edge_index, edge_type, params1, params2,
            num_edge_types, num_singleton_nodes):
    N = x.shape[0]
    src, dst = edge_index[0], edge_index[1]
    adj = jnp.zeros((num_edge_types, N, N), jnp.float32)
    adj = adj.at[edge_type, dst, src].add(1.0)

    def layer(h, params):
        A, B, bias_s, bias_p = params
        out = h @ A.T
        for t in range(num_edge_types):
            out = out + (adj[t] @ h) @ B[t].T
        node = jnp.arange(N)[:, None]
        out = out + jnp.where(node < num_singleton_nodes,
                              bias_s[None, :], bias_p[None, :])
        return jnp.clip(out, 0.0, 1.0)

    return layer(layer(x, params1), params2)


# --------------------------------- demo -------------------------------------

if __name__ == "__main__":
    num_unary = 12
    num_binary = 20
    num_features = num_unary + num_binary      # F = 32
    num_edge_types = 3
    num_singleton_nodes = 4
    num_nodes = 16
    num_edges = 40

    key = jax.random.PRNGKey(0)
    kx, ke_src, ke_dst, ke_type, kp1, kp2 = jax.random.split(key, 6)

    x = jax.random.normal(kx, (num_nodes, num_features), jnp.float32)
    edge_index = jnp.stack([
        jax.random.randint(ke_src, (num_edges,), 0, num_nodes),
        jax.random.randint(ke_dst, (num_edges,), 0, num_nodes),
    ], axis=0)                                  # [2, E]
    edge_type = jax.random.randint(ke_type, (num_edges,), 0, num_edge_types)

    params1 = init_ec_gcn_params(kp1, num_features, num_edge_types)
    params2 = init_ec_gcn_params(kp2, num_features, num_edge_types)

    out = gnn_forward(x, edge_index, edge_type, params1, params2,
                      num_edge_types, num_singleton_nodes)
    out = jax.block_until_ready(out)

    ref = gnn_ref(x, edge_index, edge_type, params1, params2,
                  num_edge_types, num_singleton_nodes)

    assert out.shape == (num_nodes, num_features)
    assert float(jnp.max(out)) <= 1.0           # mirrors the torch assert
    # Tolerance accommodates the deliberate bf16 aggregation operands (hT cast
    # + bf16 adjacency) and MXU rounding vs the f32 XLA reference; structural
    # errors (wrong adjacency orientation, bias select, weight stacking) would
    # be orders of magnitude larger.
    assert jnp.allclose(out, ref, atol=1e-2, rtol=1e-2), (
        float(jnp.max(jnp.abs(out - ref))))

    print("KERNEL_OK")
</pallas_src>

<mosaic_0001>
module attributes {stable_mosaic.version = 11 : i64} {
  func.func @_ec_gcn_layer_kernel(%arg0: i32, %arg1: memref<32x128xf32, #tpu.memory_space<vmem>>, %arg2: memref<32x128xf32, #tpu.memory_space<vmem>>, %arg3: memref<3x128x128xbf16, #tpu.memory_space<vmem>>, %arg4: memref<32x136xf32, #tpu.memory_space<vmem>>, %arg5: memref<32x128xf32, #tpu.memory_space<vmem>>) attributes {dimension_semantics = [#tpu.dimension_semantics<parallel>], iteration_bounds = array<i64: 1>, scalar_prefetch = 0 : i64, scratch_operands = 0 : i64, tpu.core_type = #tpu.core_type<tc>, window_params = [{pipeline_mode = #tpu.pipeline_mode<synchronous>, transform_indices = @transform_0, window_bounds = array<i64: 32, 128>}, {transform_indices = @transform_1, window_bounds = array<i64: 32, 128>}, {transform_indices = @transform_2, window_bounds = array<i64: 3, 128, 128>}, {pipeline_mode = #tpu.pipeline_mode<synchronous>, transform_indices = @transform_3, window_bounds = array<i64: 32, 136>}, {transform_indices = @transform_4, window_bounds = array<i64: 32, 128>}]} {
    %c0 = arith.constant 0 : index
    %c0_0 = arith.constant 0 : index
    %0 = vector.load %arg1[%c0, %c0_0] : memref<32x128xf32, #tpu.memory_space<vmem>>, vector<32x128xf32>
    %1 = arith.truncf %0 : vector<32x128xf32> to vector<32x128xbf16>
    %c0_1 = arith.constant 0 : index
    %c0_2 = arith.constant 0 : index
    %2 = vector.load %arg2[%c0_1, %c0_2] : memref<32x128xf32, #tpu.memory_space<vmem>>, vector<32x128xf32>
    %c0_3 = arith.constant 0 : index
    %c0_4 = arith.constant 0 : index
    %c0_5 = arith.constant 0 : index
    %3 = vector.load %arg3[%c0_3, %c0_4, %c0_5] : memref<3x128x128xbf16, #tpu.memory_space<vmem>>, vector<1x128x128xbf16>
    %4 = vector.shape_cast %3 : vector<1x128x128xbf16> to vector<128x128xbf16>
    %cst = arith.constant dense<0.000000e+00> : vector<32x128xf32>
    %5 = tpu.matmul %1, %4, %cst {dimension_numbers = #tpu.dot_dimension_numbers<[1], [0], [0], [1], [0, 0, 1, 1], [], []>} : vector<32x128xbf16>, vector<128x128xbf16>, vector<32x128xf32> -> vector<32x128xf32>
    %c1 = arith.constant 1 : index
    %c0_6 = arith.constant 0 : index
    %c0_7 = arith.constant 0 : index
    %6 = vector.load %arg3[%c1, %c0_6, %c0_7] : memref<3x128x128xbf16, #tpu.memory_space<vmem>>, vector<1x128x128xbf16>
    %7 = vector.shape_cast %6 : vector<1x128x128xbf16> to vector<128x128xbf16>
    %cst_8 = arith.constant dense<0.000000e+00> : vector<32x128xf32>
    %8 = tpu.matmul %1, %7, %cst_8 {dimension_numbers = #tpu.dot_dimension_numbers<[1], [0], [0], [1], [0, 0, 1, 1], [], []>} : vector<32x128xbf16>, vector<128x128xbf16>, vector<32x128xf32> -> vector<32x128xf32>
    %c2 = arith.constant 2 : index
    %c0_9 = arith.constant 0 : index
    %c0_10 = arith.constant 0 : index
    %9 = vector.load %arg3[%c2, %c0_9, %c0_10] : memref<3x128x128xbf16, #tpu.memory_space<vmem>>, vector<1x128x128xbf16>
    %10 = vector.shape_cast %9 : vector<1x128x128xbf16> to vector<128x128xbf16>
    %cst_11 = arith.constant dense<0.000000e+00> : vector<32x128xf32>
    %11 = tpu.matmul %1, %10, %cst_11 {dimension_numbers = #tpu.dot_dimension_numbers<[1], [0], [0], [1], [0, 0, 1, 1], [], []>} : vector<32x128xbf16>, vector<128x128xbf16>, vector<32x128xf32> -> vector<32x128xf32>
    %c128_i32 = arith.constant 128 : i32
    %12 = arith.muli %arg0, %c128_i32 : i32
    %13 = tpu.iota {dimensions = array<i32: 1>} : vector<8x128xi32>
    %14 = vector.broadcast %12 : i32 to vector<8x128xi32>
    %15 = arith.addi %14, %13 : vector<8x128xi32>
    %16 = tpu.iota {dimensions = array<i32: 0>} : vector<8x128xi32>
    %c4_i32 = arith.constant 4 : i32
    %17 = vector.broadcast %c4_i32 : i32 to vector<8x128xi32>
    %18 = arith.cmpi slt, %15, %17 : vector<8x128xi32>
    %19 = arith.extui %18 : vector<8x128xi1> to vector<8x128xi32>
    %20 = arith.sitofp %19 : vector<8x128xi32> to vector<8x128xf32>
    %c0_i32 = arith.constant 0 : i32
    %21 = vector.broadcast %c0_i32 : i32 to vector<8x128xi32>
    %22 = arith.cmpi eq, %16, %21 : vector<8x128xi32>
    %c1_i32 = arith.constant 1 : i32
    %23 = vector.broadcast %c1_i32 : i32 to vector<8x128xi32>
    %24 = arith.cmpi eq, %16, %23 : vector<8x128xi32>
    %cst_12 = arith.constant 1.000000e+00 : f32
    %25 = vector.broadcast %cst_12 : f32 to vector<8x128xf32>
    %26 = arith.subf %25, %20 : vector<8x128xf32>
    %cst_13 = arith.constant 0.000000e+00 : f32
    %27 = vector.broadcast %cst_13 : f32 to vector<8x128xf32>
    %28 = arith.select %24, %26, %27 : vector<8x128xi1>, vector<8x128xf32>
    %29 = arith.select %22, %20, %28 : vector<8x128xi1>, vector<8x128xf32>
    %30 = tpu.concatenate %2, %5, %8, %11, %29 in 0 : vector<32x128xf32>, vector<32x128xf32>, vector<32x128xf32>, vector<32x128xf32>, vector<8x128xf32> -> vector<136x128xf32>
    %c0_14 = arith.constant 0 : index
    %c0_15 = arith.constant 0 : index
    %31 = vector.load %arg4[%c0_14, %c0_15] : memref<32x136xf32, #tpu.memory_space<vmem>>, vector<32x136xf32>
    %cst_16 = arith.constant dense<0.000000e+00> : vector<32x128xf32>
    %32 = tpu.matmul %31, %30, %cst_16 {dimension_numbers = #tpu.dot_dimension_numbers<[1], [0], [0], [1], [0, 0, 1, 1], [], []>} : vector<32x136xf32>, vector<136x128xf32>, vector<32x128xf32> -> vector<32x128xf32>
    %cst_17 = arith.constant 0.000000e+00 : f32
    %cst_18 = arith.constant 1.000000e+00 : f32
    %33 = vector.broadcast %cst_17 : f32 to vector<32x128xf32>
    %34 = arith.maximumf %33, %32 : vector<32x128xf32>
    %35 = vector.broadcast %cst_18 : f32 to vector<32x128xf32>
    %36 = arith.minimumf %35, %34 : vector<32x128xf32>
    %c0_19 = arith.constant 0 : index
    %c0_20 = arith.constant 0 : index
    %37 = vector.load %arg5[%c0_19, %c0_20] : memref<32x128xf32, #tpu.memory_space<vmem>>, vector<32x128xf32>
    tpu.vector_store %arg5[%c0_19, %c0_20], %36 {strides = array<i32>} : memref<32x128xf32, #tpu.memory_space<vmem>>, vector<32x128xf32>,
    return
  }
  func.func @transform_0(%arg0: i32) -> (i32, i32) {
    %c0_i32 = arith.constant 0 : i32
    %c0_i32_0 = arith.constant 0 : i32
    %c0_i32_1 = arith.constant 0 : i32
    return %c0_i32, %c0_i32_0 : i32, i32
  }
  func.func @transform_1(%arg0: i32) -> (i32, i32) {
    %c0_i32 = arith.constant 0 : i32
    %c0_i32_0 = arith.constant 0 : i32
    return %c0_i32, %arg0 : i32, i32
  }
  func.func @transform_2(%arg0: i32) -> (i32, i32, i32) {
    %c0_i32 = arith.constant 0 : i32
    %c0_i32_0 = arith.constant 0 : i32
    %c0_i32_1 = arith.constant 0 : i32
    return %c0_i32, %c0_i32_0, %arg0 : i32, i32, i32
  }
  func.func @transform_3(%arg0: i32) -> (i32, i32) {
    %c0_i32 = arith.constant 0 : i32
    %c0_i32_0 = arith.constant 0 : i32
    %c0_i32_1 = arith.constant 0 : i32
    return %c0_i32, %c0_i32_0 : i32, i32
  }
  func.func @transform_4(%arg0: i32) -> (i32, i32) {
    %c0_i32 = arith.constant 0 : i32
    %c0_i32_0 = arith.constant 0 : i32
    return %c0_i32, %arg0 : i32, i32
  }
}

</mosaic_0001>

<bundles_post_ra>
// kernel: tpu_custom_call.1
= control target key start
LH: loop header
LB: loop body
LE: loop exit
PB: predicated region body
PF: predicated region fallthrough
CT: control target
= control target key end

     0   :  { %9 = vsyncpa [#allocation3], 0  ;;  %s1001_s0 = inlined_call_operand.hbm [shape: f32[32,128], index: 0, kind: input, shape index: {}]   ;;  %s1002_s1 = inlined_call_operand.hbm [shape: f32[32,128], index: 1, kind: input, shape index: {}]   ;;  %s1003_s2 = inlined_call_operand.hbm [shape: bf16[3,128,128], index: 2, kind: input, shape index: {}]   ;;  %s1004_s3 = inlined_call_operand.hbm [shape: f32[32,136], index: 3, kind: input, shape index: {}]   ;;  %s1005_s4 = inlined_call_operand.hbm [shape: f32[32,128], index: 4, kind: output, shape index: {}]  }
   0x1   :  { %10 = vsyncpa [#allocation6], 0 }
   0x2   :  { %11 = vsyncpa [#allocation9], 0 }
   0x3   :  { %12 = vsyncpa [#allocation4], 0  ;;  %s875_s15 = smov [#allocation5]   ;;  %s876_s17 = smov [#allocation2]  }
   0x4   :  { %s30_s16 = sshll.u32 %s875_s15, 4  ;;  %s18_s18 = sshll.u32 %s876_s17, 4  ;;  %s31_s16 = int_to_ptr.vmem [resolvable:$true] %s30_s16  ;;  %s913_s18 = int_to_ptr.vmem [resolvable:$true] %s18_s18 }
   0x5   :  { %s757_s21 = scalar_lea.hbm %s1002_s1, 512 }
   0x6   :  { %p758_p0 = scmp.ne.s32.totalorder %s1002_s1, %s757_s21  ;;  %p761_p1 = scmp.lt.u32.totalorder %s757_s21, %s1002_s1 }
   0x8   :  { %p763_p2 = pnand %p761_p1, %p758_p0 }
   0xa   :  { %766 = shalt.err (!%p763_p2)
}
   0xb   :  { %s767_s26 = scalar_lea.vmem %s31_s16, 512  ;;  %p772_p4 = scmp.lt.s32.totalorder %s31_s16, %s31_s16 }
   0xc   :  { %p768_p3 = scmp.ne.s32.totalorder %s31_s16, %s767_s26  ;;  %p773_p5 = scmp.lt.s32.totalorder %s767_s26, %s767_s26 }
   0xe   :  { %p774_p6 = por %p773_p5, %p772_p4 }
  0x10   :  { %p775_p7 = pnand %p774_p6, %p768_p3 }
  0x12   :  { %778 = shalt.err (!%p775_p7)
}
  0x13   :  { %s877_s27 = smov 128   ;;  %s878_s28 = smov 8  }
  0x14   :  { %36 = dma.hbm_to_vmem [thread:$0]  %s1002_s1, 512, %s31_s16, [#allocation6], %s877_s27, %s877_s27, %s878_s28  }
  0x15   :  { %s779_s7 = scalar_lea.hbm %s1001_s0, 512 }
  0x16   :  { %p780_p8 = scmp.ne.s32.totalorder %s1001_s0, %s779_s7  ;;  %p783_p9 = scmp.lt.u32.totalorder %s779_s7, %s1001_s0 }
  0x18   :  { %p785_p10 = pnand %p783_p9, %p780_p8 }
  0x1a   :  { %788 = shalt.err (!%p785_p10)
}
  0x1b   :  { %s789_s12 = scalar_lea.vmem %s913_s18, 512  ;;  %p794_p12 = scmp.lt.s32.totalorder %s913_s18, %s913_s18 }
  0x1c   :  { %p790_p11 = scmp.ne.s32.totalorder %s913_s18, %s789_s12  ;;  %p795_p13 = scmp.lt.s32.totalorder %s789_s12, %s789_s12 }
  0x1e   :  { %p796_p0 = por %p795_p13, %p794_p12 }
  0x20   :  { %p797_p1 = pnand %p796_p0, %p790_p11 }
  0x22   :  { %800 = shalt.err (!%p797_p1)
}
  0x23   :  { %24 = dma.hbm_to_vmem [thread:$0]  %s1001_s0, 512, %s913_s18, [#allocation3], %s877_s27, %s877_s27, %s878_s28  }
  0x24   :  { %s879_s14 = smov [#allocation7]   ;;  %s801_s19 = scalar_lea.hbm %s1003_s2, 3072 }
  0x25   :  { %s42_s15 = sshll.u32 %s879_s14, 4  ;;  %p802_p2 = scmp.ne.s32.totalorder %s1003_s2, %s801_s19  ;;  %s43_s15 = int_to_ptr.vmem [resolvable:$true] %s42_s15 }
  0x26   :  { %p805_p3 = scmp.lt.u32.totalorder %s801_s19, %s1003_s2 }
  0x28   :  { %p807_p4 = pnand %p805_p3, %p802_p2 }
  0x2a   :  { %810 = shalt.err (!%p807_p4)
}
  0x2b   :  { %s811_s24 = scalar_lea.vmem %s43_s15, 3072  ;;  %p816_p6 = scmp.lt.s32.totalorder %s43_s15, %s43_s15 }
  0x2c   :  { %p812_p5 = scmp.ne.s32.totalorder %s43_s15, %s811_s24  ;;  %p817_p7 = scmp.lt.s32.totalorder %s811_s24, %s811_s24 }
  0x2e   :  { %p818_p8 = por %p817_p7, %p816_p6 }
  0x30   :  { %p819_p9 = pnand %p818_p8, %p812_p5 }
  0x32   :  { %822 = shalt.err (!%p819_p9)
}
  0x33   :  { %s880_s0 = smov 64   ;;  %s881_s18 = smov 4  }
  0x34   :  { %48 = dma.hbm_to_vmem [thread:$0]  %s1003_s2, 3072, %s43_s15, [#allocation6], %s880_s0, %s880_s0, %s881_s18  }
  0x35   :  { %s882_s29 = smov [#allocation8]   ;;  %s823_s7 = scalar_lea.hbm %s1004_s3, 1024 }
  0x36   :  { %s54_s30 = sshll.u32 %s882_s29, 4  ;;  %p824_p10 = scmp.ne.s32.totalorder %s1004_s3, %s823_s7  ;;  %s55_s30 = int_to_ptr.vmem [resolvable:$true] %s54_s30 }
  0x37   :  { %p827_p11 = scmp.lt.u32.totalorder %s823_s7, %s1004_s3 }
  0x39   :  { %p829_p12 = pnand %p827_p11, %p824_p10 }
  0x3b   :  { %832 = shalt.err (!%p829_p12)
}
  0x3c   :  { %s833_s12 = scalar_lea.vmem %s55_s30, 1024  ;;  %p838_p0 = scmp.lt.s32.totalorder %s55_s30, %s55_s30 }
  0x3d   :  { %p834_p13 = scmp.ne.s32.totalorder %s55_s30, %s833_s12  ;;  %p839_p1 = scmp.lt.s32.totalorder %s833_s12, %s833_s12 }
  0x3f   :  { %p840_p2 = por %p839_p1, %p838_p0 }
  0x41   :  { %p841_p3 = pnand %p840_p2, %p834_p13 }
  0x43   :  { %844 = shalt.err (!%p841_p3)
}
  0x44   :  { %s883_s2 = smov 256   ;;  %s884_s1 = smov 16  }
  0x45   :  { %60 = dma.hbm_to_vmem [thread:$0]  %s1004_s3, 1024, %s55_s30, [#allocation9], %s883_s2, %s883_s2, %s884_s1  }
  0x46   :  { %867 = dma.done.wait [#allocation3], 512  }
  0x47   :  { %868 = vsyncadd [#allocation3], 4294966784 }
  0x48   :  { %869 = dma.done.wait [#allocation6], 3584  }
  0x49   :  { %870 = vsyncadd [#allocation6], 4294963712 }
  0x4a   :  { %871 = dma.done.wait [#allocation9], 1024  }
  0x4b   :  { %872 = vsyncadd [#allocation9], 4294966272  ;;  %v733_v0 = vld [vmem:[#allocation7] sm:$0xff]   ;;  %v734_v1 = vld [vmem:[#allocation7 + $0x8] sm:$0xff]   ;;  %v885_v28 = vmov 0.0|0.0   ;;  %vm448_vm0 = vcmask 64512   ;;  %v426_v50 = vlaneseq }
  0x4c   :  { %636 = vmatprep.subr.bf16.mxu0 %v733_v0  ;;  %v735_v2 = vld [vmem:[#allocation7 + $0x10] sm:$0xff]   ;;  %v738_v3 = vld [vmem:[#allocation7 + $0x40] sm:$0xff]   ;;  %v740_v4 = vld [vmem:[#allocation7 + $0x48] sm:$0xff]   ;;  %v886_v54 = vmov 0.0   ;;  %s887_s3 = smov [#allocation10]  }
  0x4d   :  { %637 = vmatpush3.bf16.msra.mxu0 %v733_v0  ;;  %656 = vmatprep.subr.bf16.mxu1 %v738_v3  ;;  %v736_v5 = vld [vmem:[#allocation7 + $0x18] sm:$0xff]   ;;  %v742_v6 = vld [vmem:[#allocation7 + $0x50] sm:$0xff]   ;;  %v737_v7 = vld [vmem:[#allocation7 + $0x20] sm:$0xff]   ;;  %v427_v51 = vand.u32 127, %v426_v50  ;;  %v431_v56 = vshrl.u32 %v426_v50, 7  ;;  %s563_s15 = sshll.u32 %s887_s3, 4  ;;  %s564_s15 = int_to_ptr.vmem [resolvable:$true] %s563_s15 }
  0x4e   :  { %638 = vmatprep.subr.bf16.mxu0 %v734_v1  ;;  %657 = vmatpush3.bf16.msra.mxu1 %v738_v3  ;;  %v74_v8 = vld [vmem:[#allocation2] sm:$0xff]  ;;  %v75_v9 = vld [vmem:[#allocation2 + $0x8] sm:$0xff]  ;;  %v744_v10 = vld [vmem:[#allocation7 + $0x58] sm:$0xff]   ;;  %s845_s16 = scalar_lea.vmem %s564_s15, 512  ;;  %p850_p5 = scmp.lt.s32.totalorder %s564_s15, %s564_s15 }
  0x4f   :  { %658 = vmatprep.subr.bf16.mxu1 %v740_v4  ;;  %v78_v11 = vpack.c.bf16 %v75_v9, %v74_v8  ;;  %v739_v12 = vld [vmem:[#allocation7 + $0x28] sm:$0xff]   ;;  %v746_v13 = vld [vmem:[#allocation7 + $0x60] sm:$0xff]   ;;  %v741_v14 = vld [vmem:[#allocation7 + $0x30] sm:$0xff]   ;;  %vm432_vm1 = vcmp.lt.s32.totalorder %v427_v51, 4  ;;  %vm436_vm2 = vcmp.eq.s32.totalorder %v431_v56, 1  ;;  %vm435_vm3 = vcmp.eq.s32.totalorder %v431_v56, 0  ;;  %p846_p4 = scmp.ne.s32.totalorder %s564_s15, %s845_s16  ;;  %p851_p6 = scmp.lt.s32.totalorder %s845_s16, %s845_s16 }
  0x50   :  { %v748_v15 = vld [vmem:[#allocation7 + $0x68] sm:$0xff]   ;;  %v743_v16 = vld [vmem:[#allocation7 + $0x38] sm:$0xff]   ;;  %v750_v17 = vld [vmem:[#allocation7 + $0x70] sm:$0xff]   ;;  %v601_v55 = vsel %vm432_vm1, 1.0, %v886_v54 }
  0x51   :  { %639 = vmatpush3.bf16.msra.mxu0 %v734_v1  ;;  %652 = vmatprep.mubr.bf16.mxu0 %v78_v11  ;;  %v76_v18 = vld [vmem:[#allocation2 + $0x10] sm:$0xff]  ;;  %v77_v19 = vld [vmem:[#allocation2 + $0x18] sm:$0xff]  ;;  %v745_v20 = vld [vmem:[#allocation7 + $0x80] sm:$0xff]   ;;  %v437_v61 = vsub.f32 1.0, %v601_v55  ;;  %p852_p7 = por %p851_p6, %p850_p5 }
  0x52   :  { %640 = vmatprep.subr.bf16.mxu0 %v735_v2  ;;  %659 = vmatpush3.bf16.msra.mxu1 %v740_v4  ;;  %v752_v21 = vld [vmem:[#allocation7 + $0x78] sm:$0xff]   ;;  %v79_v22 = vpack.c.bf16 %v77_v19, %v76_v18  ;;  %v747_v23 = vld [vmem:[#allocation7 + $0x88] sm:$0xff]   ;;  %v80_v24 = vld [vmem:[#allocation5] sm:$0xff] }
  0x53   :  { %660 = vmatprep.subr.bf16.mxu1 %v742_v6  ;;  %672 = vmatprep.mubr.bf16.mxu1 %v78_v11  ;;  %v81_v25 = vld [vmem:[#allocation5 + $0x8] sm:$0xff]  ;;  %v749_v26 = vld [vmem:[#allocation7 + $0x90] sm:$0xff]   ;;  %v751_v29 = vld [vmem:[#allocation7 + $0x98] sm:$0xff]   ;;  %v438_v62 = vsel %vm436_vm2, %v437_v61, 0.0  ;;  %p853_p8 = pnand %p852_p7, %p846_p4 }
  0x54   :  { %v697_v27 = vpack.c.bf16 %v81_v25, %v80_v24  ;;  %v753_v30 = vld [vmem:[#allocation7 + $0xa0] sm:$0xff]   ;;  %v754_v31 = vld [vmem:[#allocation7 + $0xa8] sm:$0xff]   ;;  %v755_v32 = vld [vmem:[#allocation7 + $0xb0] sm:$0xff]   ;;  %v439_v63 = vsel %vm435_vm3, %v601_v55, %v438_v62 }
  0x55   :  { %641 = vmatpush3.bf16.msra.mxu0 %v735_v2  ;;  %v756_v33 = vld [vmem:[#allocation7 + $0xb8] sm:$0xff]   ;;  %v82_v34 = vld [vmem:[#allocation5 + $0x10] sm:$0xff]  ;;  %v441_v37 = vld [vmem:[#allocation8 + $0x8] sm:$0xff] }
  0x56   :  { %642 = vmatprep.subr.bf16.mxu0 %v736_v5  ;;  %661 = vmatpush3.bf16.msra.mxu1 %v742_v6  ;;  %v83_v35 = vld [vmem:[#allocation5 + $0x18] sm:$0xff]  ;;  %v440_v0 = vld [vmem:[#allocation8] sm:$0xff]  ;;  %v442_v2 = vld [vmem:[#allocation8 + $0x10] sm:$0xff] }
  0x57   :  { %662 = vmatprep.subr.bf16.mxu1 %v744_v10  ;;  %v700_v36 = vpack.c.bf16 %v83_v35, %v82_v34  ;;  %v443_v1 = vld [vmem:[#allocation8 + $0x18] sm:$0xff]  ;;  %v445_v3 = vld [vmem:[#allocation8 + $0x28] sm:$0xff]  ;;  %v444_v4 = vld [vmem:[#allocation8 + $0x20] sm:$0xff] }
  0x58   :  { %v446_v6 = vld [vmem:[#allocation8 + $0x30] sm:$0xff] }
  0x59   :  { %643 = vmatpush3.bf16.msra.mxu0 %v736_v5  ;;  %v447_v5 = vld [vmem:[#allocation8 + $0x38] sm:$0xff] }
  0x5a   :  { %644 = vmatprep.subr.bf16.mxu0 %v737_v7  ;;  %663 = vmatpush3.bf16.msra.mxu1 %v744_v10 }
  0x5b   :  { %664 = vmatprep.subr.bf16.mxu1 %v746_v13 }
  0x5d   :  { %645 = vmatpush3.bf16.msra.mxu0 %v737_v7 }
  0x5e   :  { %646 = vmatprep.subr.bf16.mxu0 %v739_v12  ;;  %665 = vmatpush3.bf16.msra.mxu1 %v746_v13 }
  0x5f   :  { %666 = vmatprep.subr.bf16.mxu1 %v748_v15 }
  0x61   :  { %647 = vmatpush3.bf16.msra.mxu0 %v739_v12 }
  0x62   :  { %648 = vmatprep.subr.bf16.mxu0 %v741_v14  ;;  %667 = vmatpush3.bf16.msra.mxu1 %v748_v15 }
  0x63   :  { %668 = vmatprep.subr.bf16.mxu1 %v750_v17 }
  0x65   :  { %649 = vmatpush3.bf16.msra.mxu0 %v741_v14 }
  0x66   :  { %650 = vmatprep.subr.bf16.mxu0 %v743_v16  ;;  %669 = vmatpush3.bf16.msra.mxu1 %v750_v17 }
  0x67   :  { %670 = vmatprep.subr.bf16.mxu1 %v752_v21 }
  0x69   :  { %651 = vmatpush3.bf16.msra.mxu0 %v743_v16 }
  0x6a   :  { %676 = vmatprep.subr.bf16.mxu0 %v745_v20  ;;  %671 = vmatpush3.bf16.msra.mxu1 %v752_v21 }
  0x6b   :  { %696 = vmatprep.subr.bf16.mxu1 %v885_v28 }
  0x6c   :  { %653 = vmatmul.mubr.bf16.vlgmr.msra.gmra.mrb[0].mxu0 %v79_v22 }
  0x6d   :  { %677 = vmatpush3.bf16.msra.mxu0 %v745_v20  ;;  %692 = vmatprep.mubr.bf16.mxu0 %v78_v11 }
  0x6e   :  { %678 = vmatprep.subr.bf16.mxu0 %v747_v23  ;;  %673 = vmatmul.mubr.bf16.vlgmr.msra.gmra.mrb[0].mxu1 %v79_v22 }
  0x6f   :  { %698 = vmatpush1.bf16.msra.mxu1 %v697_v27  ;;  %602 = vmatprep.mubr.msk.f32.mxu1 %vm448_vm0, %v441_v37 }
  0x70   :  { %699 = vmatprep.subr.bf16.mxu1 %v885_v28 }
  0x71   :  { %679 = vmatpush3.bf16.msra.mxu0 %v747_v23 }
  0x72   :  { %680 = vmatprep.subr.bf16.mxu0 %v749_v26 }
  0x73   :  { %701 = vmatpush1.bf16.msra.mxu1 %v700_v36 }
  0x74   :  { %702 = vmatprep.subr.bf16.mxu1 %v885_v28 }
  0x75   :  { %681 = vmatpush3.bf16.msra.mxu0 %v749_v26 }
  0x76   :  { %682 = vmatprep.subr.bf16.mxu0 %v751_v29 }
  0x79   :  { %683 = vmatpush3.bf16.msra.mxu0 %v751_v29 }
  0x7a   :  { %684 = vmatprep.subr.bf16.mxu0 %v753_v30 }
  0x7d   :  { %685 = vmatpush3.bf16.msra.mxu0 %v753_v30 }
  0x7e   :  { %686 = vmatprep.subr.bf16.mxu0 %v754_v31 }
  0x81   :  { %687 = vmatpush3.bf16.msra.mxu0 %v754_v31 }
  0x82   :  { %688 = vmatprep.subr.bf16.mxu0 %v755_v32 }
  0x85   :  { %689 = vmatpush3.bf16.msra.mxu0 %v755_v32 }
  0x86   :  { %690 = vmatprep.subr.bf16.mxu0 %v756_v33 }
  0x89   :  { %691 = vmatpush3.bf16.msra.mxu0 %v756_v33 }
  0x8c   :  { %693 = vmatmul.mubr.bf16.vlgmr.msra.gmra.mrb[4].mxu0 %v79_v22 }
 0x13f   :  { %v654_v38 = vpop.f32.mrb[0].mxu0 }
 0x140   :  { %v182_v39 = vpop.f32.mrb[1].mxu0 }
 0x141   :  { %v655_v40 = vpop.f32.mrb[2].mxu0  ;;  %v674_v44 = vpop.f32.mrb[0].mxu1 }
 0x142   :  { %v706_v41 = vpack.c.bf16 %v655_v40, %v654_v38  ;;  %v185_v42 = vpop.f32.mrb[3].mxu0  ;;  %v296_v45 = vpop.f32.mrb[1].mxu1 }
 0x143   :  { %v703_v43 = vpack.c.bf16 %v185_v42, %v182_v39  ;;  %v675_v46 = vpop.f32.mrb[2].mxu1 }
 0x144   :  { %v712_v47 = vpack.c.bf16 %v675_v46, %v674_v44  ;;  %v299_v48 = vpop.f32.mrb[3].mxu1 }
 0x145   :  { %704 = vmatpush1.bf16.msra.mxu1 %v703_v43  ;;  %v709_v49 = vpack.c.bf16 %v299_v48, %v296_v45 }
 0x146   :  { %705 = vmatprep.subr.bf16.mxu1 %v885_v28 }
 0x149   :  { %707 = vmatpush1.bf16.msra.mxu1 %v706_v41 }
 0x14a   :  { %708 = vmatprep.subr.bf16.mxu1 %v885_v28 }
 0x14d   :  { %710 = vmatpush1.bf16.msra.mxu1 %v709_v49 }
 0x14e   :  { %711 = vmatprep.subr.bf16.mxu1 %v885_v28 }
 0x151   :  { %713 = vmatpush1.bf16.msra.mxu1 %v712_v47 }
 0x152   :  { %714 = vmatprep.subr.bf16.mxu1 %v885_v28 }
 0x15f   :  { %v694_v52 = vpop.f32.mrb[4].mxu0 }
 0x160   :  { %v410_v53 = vpop.f32.mrb[5].mxu0 }
 0x161   :  { %v695_v57 = vpop.f32.mrb[6].mxu0 }
 0x162   :  { %v718_v58 = vpack.c.bf16 %v695_v57, %v694_v52  ;;  %v413_v59 = vpop.f32.mrb[7].mxu0 }
 0x163   :  { %v715_v60 = vpack.c.bf16 %v413_v59, %v410_v53 }
 0x165   :  { %716 = vmatpush1.bf16.msra.mxu1 %v715_v60 }
 0x166   :  { %717 = vmatprep.subr.bf16.mxu1 %v885_v28 }
 0x169   :  { %719 = vmatpush1.bf16.msra.mxu1 %v718_v58 }
 0x16a   :  { %493 = vmatprep.subr.mxu1 %v886_v54 }
 0x16d   :  { %494 = vmatpush1.msra.mxu1 %v439_v63 }
 0x16e   :  { %526 = vmatmul.mubr.f32.vlgmr.msra.gmra.mrb[4].mxu1 %v440_v0 }
 0x16f   :  { %603 = vmatprep.mubr.msk.f32.mxu1 %vm448_vm0, %v443_v1 }
 0x172   :  { %531 = vmatmul.mubr.f32.gmra.mrb[6].mxu1 %v442_v2 }
 0x173   :  { %604 = vmatprep.mubr.msk.f32.mxu1 %vm448_vm0, %v445_v3 }
 0x176   :  { %536 = vmatmul.mubr.f32.gmra.mrb[8].mxu1 %v444_v4 }
 0x177   :  { %605 = vmatprep.mubr.msk.f32.mxu1 %vm448_vm0, %v447_v5 }
 0x17a   :  { %541 = vmatmul.mubr.f32.gmra.mrb[10].mxu1 %v446_v6 }
 0x241   :  { %v527_v7 = vpop.f32.mrb[4].mxu1 }
 0x242   :  { %v546_v8 = vmax.f32 %v527_v7, 0.0  ;;  %v529_v9 = vpop.f32.mrb[5].mxu1 }
 0x244   :  { %v550_v10 = vmin.f32 %v546_v8, 1.0 }
 0x245   :  { %v532_v11 = vpop.f32.mrb[6].mxu1 }
 0x246   :  { %554 = vst [vmem:[#allocation10] sm:$0xff] %v550_v10  ;;  %v547_v12 = vmax.f32 %v532_v11, 0.0  ;;  %v534_v13 = vpop.f32.mrb[7].mxu1 }
 0x248   :  { %v551_v14 = vmin.f32 %v547_v12, 1.0 }
 0x249   :  { %v537_v15 = vpop.f32.mrb[8].mxu1 }
 0x24a   :  { %555 = vst [vmem:[#allocation10 + $0x8] sm:$0xff] %v551_v14  ;;  %v548_v16 = vmax.f32 %v537_v15, 0.0  ;;  %v539_v17 = vpop.f32.mrb[9].mxu1 }
 0x24c   :  { %v552_v18 = vmin.f32 %v548_v16, 1.0 }
 0x24d   :  { %v542_v19 = vpop.f32.mrb[10].mxu1 }
 0x24e   :  { %556 = vst [vmem:[#allocation10 + $0x10] sm:$0xff] %v552_v18  ;;  %v549_v20 = vmax.f32 %v542_v19, 0.0  ;;  %v544_v21 = vpop.f32.mrb[11].mxu1 }
 0x250   :  { %v553_v22 = vmin.f32 %v549_v20, 1.0 }
 0x252   :  { %557 = vst [vmem:[#allocation10 + $0x18] sm:$0xff] %v553_v22 }
 0x253   :  { %856 = shalt.err (!%p853_p8)
}
 0x254   :  { %s857_s20 = scalar_lea.hbm %s1005_s4, 512 }
 0x255   :  { %p858_p9 = scmp.ne.s32.totalorder %s1005_s4, %s857_s20  ;;  %p861_p10 = scmp.lt.u32.totalorder %s857_s20, %s1005_s4 }
 0x257   :  { %p863_p11 = pnand %p861_p10, %p858_p9 }
 0x259   :  { %866 = shalt.err (!%p863_p11)
}
 0x25a   :  { %569 = dma.vmem_to_hbm [thread:$0]  %s564_s15, 512, %s1005_s4, [#allocation4], %s877_s27, %s877_s27, %s878_s28  }
 0x25b   :  { %873 = dma.done.wait [#allocation4], 512  }
 0x25c   :  { %874 = vsyncadd [#allocation4], 4294966784 }
 0x25d   :  { %573 = vsyncpa [#allocation3], 1 }
 0x25e   :  { %574 = vsyncpa [#allocation6], 1 }
 0x25f   :  { %575 = vsyncpa [#allocation9], 1 }
 0x260   :  { %576 = vsyncpa [#allocation4], 1 }

</bundles_post_ra>
